<compile_context>
chip_gen: v5e
topology: v5e:2x2
jax: 0.10.0
libtpu: 0.0.40
codegen_flags: <defaults>
</compile_context>

<pallas_src>
import functools

import jax
import jax.numpy as jnp
from jax.experimental import pallas as pl
from jax.experimental.pallas import tpu as pltpu

_LANE = 128
_ROW_GRAN = 32          # row-tile granularity safe for f32 / bf16 / int8 native tiling
_CLAMP_LO = -134217728.0
_CLAMP_HI = 134217727.0  # rounds to 2^27 in f32, same as torch's f32 clamp


def _hard_update_kernel(v_ref, x_ref, spike_ref, o_ref, *, quantize):
    # v_ref: (1,) f32 in SMEM (reset value, already rounded*scaled if quantized).
    # x_ref / spike_ref / o_ref: (br, 128) VMEM tiles.
    x = x_ref[...].astype(jnp.float32)
    s = spike_ref[...].astype(jnp.float32)
    v = v_ref[0]
    # out = s*v + (1-s)*x, rewritten as a 3-op blend (fewer VALU ops / temporaries).
    out = x + s * (v - x)
    if quantize:
        out = jnp.clip(out, _CLAMP_LO, _CLAMP_HI)
    o_ref[...] = out.astype(o_ref.dtype)


def _device_kind() -> str:
    try:
        return jax.devices()[0].device_kind.lower()
    except Exception:
        return ""


def _is_multi_tc(kind: str) -> bool:
    # Chips whose Pallas "parallel" grid axes shard across 2 TensorCores
    # (megacore v4 / v5p, dual-TC v7x).  v5e / v6e have a single TC.
    return any(tag in kind for tag in ("v4", "v5p", "v7"))


def _default_block_rows(kind: str) -> int:
    # v2/v3/v5e: small scoped-VMEM default -> keep 1 MiB f32 blocks (~85% of roofline).
    if any(tag in kind for tag in ("v2", "v3", "v5e", "v5 lite", "v5lite")):
        return 2048
    # v6e / v7x: 2 MiB f32 blocks amortize the ~0.35 µs/grid-step overhead;
    # ~12 MiB worst-case double-buffered working set, under the 32 MiB scoped default.
    return 4096


def q_hard_update_after_spike(x, spike, weight_scale, value,
                              quantization_mode: bool = False,
                              block_rows: int | None = None,
                              donate_x: bool = False):
    """Pallas implementation of QHardUpdateAfterSpike.forward.

    x, spike: same-shape arrays (any rank; spike may be int8/bool/float).
    weight_scale: scalar (array or python number). value: python float.
    """
    assert x.shape == spike.shape, "x and spike must have the same shape"
    n = x.size
    orig_shape = x.shape

    kind = _device_kind()
    if block_rows is None:
        block_rows = _default_block_rows(kind)
    block_rows = max(_ROW_GRAN, (block_rows // _ROW_GRAN) * _ROW_GRAN)

    # Lane-dense (R, 128) view.  Rare fallback: element count not a multiple of
    # 128 -> pad the flat vector by <= 127 elements (avoids the 8x sublane-padded
    # VMEM blowup of a (1, n) block) and slice the tail off afterwards.
    xf = x.reshape(-1)
    sf = spike.reshape(-1)
    pad = (-n) % _LANE
    if pad:
        xf = jnp.pad(xf, (0, pad))
        sf = jnp.pad(sf, (0, pad))
    R = (n + pad) // _LANE
    x2 = xf.reshape(R, _LANE)
    s2 = sf.reshape(R, _LANE)

    # Row tile / grid shaping.
    if R <= block_rows:
        if _is_multi_tc(kind) and R >= 4 * _ROW_GRAN:
            # >= 4 "parallel" steps so both TensorCores get >= 2 pipelined
            # iterations each (megacore / v7x); each step stays 32-row aligned.
            br = ((pl.cdiv(R, 4) + _ROW_GRAN - 1) // _ROW_GRAN) * _ROW_GRAN
        else:
            # Single TC: the grid is a serial loop — keep one full-extent block.
            br = R
    else:
        br = block_rows
    grid = (pl.cdiv(R, br),)

    # Reset value as an SMEM scalar.  Quantized path: round(value * weight_scale)
    # computed on-device as a scalar (round-half-to-even == Python round()); no
    # host sync, no recompile per distinct `value`.
    if quantization_mode:
        v_arr = jnp.round(jnp.float32(value) *
                          jnp.asarray(weight_scale, jnp.float32))
    else:
        v_arr = jnp.float32(value)
    v_arr = v_arr.reshape((1,)).astype(jnp.float32)

    kernel = functools.partial(_hard_update_kernel,
                               quantize=bool(quantization_mode))

    # Only request extra scoped VMEM if a caller-supplied block_rows needs it.
    bytes_per_row = _LANE * (2 * jnp.dtype(x.dtype).itemsize +
                             jnp.dtype(spike.dtype).itemsize)
    working = 2 * br * bytes_per_row            # double-buffered x + spike + out
    cp_kwargs = dict(dimension_semantics=("parallel",))
    if working > 14 * (1 << 20):
        cp_kwargs["vmem_limit_bytes"] = int(min(2 * working, 64 * (1 << 20)))

    alias = {"input_output_aliases": {1: 0}} if donate_x else {}

    out2 = pl.pallas_call(
        kernel,
        out_shape=jax.ShapeDtypeStruct((R, _LANE), x.dtype),
        grid_spec=pltpu.PrefetchScalarGridSpec(
            num_scalar_prefetch=0,
            grid=grid,
            in_specs=[
                pl.BlockSpec(memory_space=pltpu.SMEM),            # reset value scalar
                pl.BlockSpec((br, _LANE), lambda i: (i, 0)),      # x
                pl.BlockSpec((br, _LANE), lambda i: (i, 0)),      # spike
            ],
            out_specs=pl.BlockSpec((br, _LANE), lambda i: (i, 0)),
        ),
        compiler_params=pltpu.CompilerParams(**cp_kwargs),
        **alias,
    )(v_arr, x2, s2)

    out = out2.reshape(-1)
    if pad:
        out = out[:n]
    return out.reshape(orig_shape)


def _reference(x, spike, weight_scale, value, quantization_mode=False):
    s = spike.astype(jnp.float32)
    xf = x.astype(jnp.float32)
    v = jnp.float32(value)
    if quantization_mode:
        v = jnp.round(v * jnp.asarray(weight_scale, jnp.float32))
    out = s * v + (1.0 - s) * xf
    if quantization_mode:
        out = jnp.clip(out, _CLAMP_LO, _CLAMP_HI)
    return out.astype(x.dtype)


if __name__ == "__main__":
    key = jax.random.PRNGKey(0)
    k1, k2, k3, k4 = jax.random.split(key, 4)

    # Test 1: NCHW membrane potential, spike in its natural int8 {0,1} form.
    N, C, H, W = 2, 4, 16, 16
    x = jax.random.normal(k1, (N, C, H, W), dtype=jnp.float32) * 3.0
    spike = (jax.random.uniform(k2, (N, C, H, W)) > 0.5).astype(jnp.int8)
    weight_scale = jnp.asarray(7.0, dtype=jnp.float32)
    value = 0.25

    out = q_hard_update_after_spike(x, spike, weight_scale, value,
                                    quantization_mode=False)
    jax.block_until_ready(out)
    assert jnp.allclose(out, _reference(x, spike, weight_scale, value, False),
                        atol=1e-5), "mismatch (fp path)"

    out_q = q_hard_update_after_spike(x, spike, weight_scale, value,
                                      quantization_mode=True)
    jax.block_until_ready(out_q)
    assert jnp.allclose(out_q, _reference(x, spike, weight_scale, value, True),
                        atol=1e-5), "mismatch (quantized path)"

    # Test 2: float spike; 45 flattened rows with a forced small block ->
    # multi-step grid with a masked (partial) last tile.
    x2 = jax.random.normal(k3, (3, 5, 24, 16), dtype=jnp.float32)
    sp2 = (jax.random.uniform(k4, (3, 5, 24, 16)) > 0.5).astype(jnp.float32)
    out2 = q_hard_update_after_spike(x2, sp2, weight_scale, 1.5,
                                     quantization_mode=False, block_rows=32)
    jax.block_until_ready(out2)
    assert jnp.allclose(out2, _reference(x2, sp2, weight_scale, 1.5, False),
                        atol=1e-5), "mismatch (partial-block path)"

    # Test 3: element count not a multiple of 128 -> pad-to-lane fallback path.
    x3 = jax.random.normal(k1, (2, 3, 5, 7), dtype=jnp.float32)
    sp3 = (jax.random.uniform(k2, (2, 3, 5, 7)) > 0.5).astype(jnp.int8)
    out3 = q_hard_update_after_spike(x3, sp3, weight_scale, -0.5,
                                     quantization_mode=True)
    jax.block_until_ready(out3)
    assert jnp.allclose(out3, _reference(x3, sp3, weight_scale, -0.5, True),
                        atol=1e-5), "mismatch (non-128 fallback path)"

    print("KERNEL_OK")
</pallas_src>

<mosaic_0001>
module attributes {stable_mosaic.version = 11 : i64} {
  func.func @_hard_update_kernel(%arg0: i32, %arg1: memref<1xf32, #tpu.memory_space<smem>>, %arg2: memref<16x128xf32, #tpu.memory_space<vmem>>, %arg3: memref<16x128xi8, #tpu.memory_space<vmem>>, %arg4: memref<16x128xf32, #tpu.memory_space<vmem>>) attributes {dimension_semantics = [#tpu.dimension_semantics<parallel>], iteration_bounds = array<i64: 1>, scalar_prefetch = 0 : i64, scratch_operands = 0 : i64, tpu.core_type = #tpu.core_type<tc>, window_params = [{transform_indices = @transform_0, window_bounds = array<i64: 1>}, {transform_indices = @transform_1, window_bounds = array<i64: 16, 128>}, {transform_indices = @transform_2, window_bounds = array<i64: 16, 128>}, {transform_indices = @transform_3, window_bounds = array<i64: 16, 128>}]} {
    %c0 = arith.constant 0 : index
    %c0_0 = arith.constant 0 : index
    %0 = vector.load %arg2[%c0, %c0_0] : memref<16x128xf32, #tpu.memory_space<vmem>>, vector<16x128xf32>
    %c0_1 = arith.constant 0 : index
    %c0_2 = arith.constant 0 : index
    %1 = vector.load %arg3[%c0_1, %c0_2] : memref<16x128xi8, #tpu.memory_space<vmem>>, vector<16x128xi8>
    %2 = arith.sitofp %1 : vector<16x128xi8> to vector<16x128xf32>
    %c0_3 = arith.constant 0 : index
    %3 = memref.load %arg1[%c0_3] : memref<1xf32, #tpu.memory_space<smem>>
    %4 = vector.broadcast %3 : f32 to vector<16x128xf32>
    %5 = arith.subf %4, %0 : vector<16x128xf32>
    %6 = arith.mulf %2, %5 : vector<16x128xf32>
    %7 = arith.addf %0, %6 : vector<16x128xf32>
    %c0_4 = arith.constant 0 : index
    %c0_5 = arith.constant 0 : index
    %8 = vector.load %arg4[%c0_4, %c0_5] : memref<16x128xf32, #tpu.memory_space<vmem>>, vector<16x128xf32>
    tpu.vector_store %arg4[%c0_4, %c0_5], %7 {strides = array<i32>} : memref<16x128xf32, #tpu.memory_space<vmem>>, vector<16x128xf32>,
    return
  }
  func.func @transform_0(%arg0: i32) -> i32 {
    %c0_i32 = arith.constant 0 : i32
    %c0_i32_0 = arith.constant 0 : i32
    return %c0_i32 : i32
  }
  func.func @transform_1(%arg0: i32) -> (i32, i32) {
    %c0_i32 = arith.constant 0 : i32
    %c0_i32_0 = arith.constant 0 : i32
    return %arg0, %c0_i32 : i32, i32
  }
  func.func @transform_2(%arg0: i32) -> (i32, i32) {
    %c0_i32 = arith.constant 0 : i32
    %c0_i32_0 = arith.constant 0 : i32
    return %arg0, %c0_i32 : i32, i32
  }
  func.func @transform_3(%arg0: i32) -> (i32, i32) {
    %c0_i32 = arith.constant 0 : i32
    %c0_i32_0 = arith.constant 0 : i32
    return %arg0, %c0_i32 : i32, i32
  }
}

</mosaic_0001>

<bundles_post_ra>
// kernel: tpu_custom_call.1
= control target key start
LH: loop header
LB: loop body
LE: loop exit
PB: predicated region body
PF: predicated region fallthrough
CT: control target
= control target key end

     0   :  { %9 = vsyncpa [#allocation4], 0  ;;  %s220_s0 = inlined_call_operand.<no memory space> [shape: f32[1], index: 0, kind: input, shape index: {}]   ;;  %s221_s1 = inlined_call_operand.hbm [shape: f32[16,128], index: 1, kind: input, shape index: {}]   ;;  %s222_s2 = inlined_call_operand.hbm [shape: s8[16,128], index: 2, kind: input, shape index: {}]   ;;  %s223_s3 = inlined_call_operand.hbm [shape: f32[16,128], index: 3, kind: output, shape index: {}]  }
   0x1   :  { %10 = vsyncpa [#allocation7], 0 }
   0x2   :  { %11 = vsyncpa [#allocation5], 0  ;;  %s18_s14 = sshll.u32 %s221_s1, 4  ;;  %s175_s15 = smov [#allocation3]   ;;  %s19_s14 = int_to_ptr.hbm [resolvable:$true] %s18_s14 }
   0x3   :  { %s20_s16 = sshll.u32 %s175_s15, 4  ;;  %s31_s19 = sshll.u32 %s222_s2, 4  ;;  %s21_s16 = int_to_ptr.vmem [resolvable:$true] %s20_s16  ;;  %s32_s19 = int_to_ptr.hbm [resolvable:$true] %s31_s19 }
   0x4   :  { %s176_s20 = smov 128   ;;  %s177_s21 = smov 8  }
   0x5   :  { %26 = dma.hbm_to_vmem [thread:$0]  %s19_s14, 256, %s21_s16, [#allocation4], %s176_s20, %s176_s20, %s177_s21  }
   0x6   :  { %s178_s22 = smov [#allocation6]   ;;  %s179_s24 = smov 32  }
   0x7   :  { %s33_s23 = sshll.u32 %s178_s22, 4  ;;  %s180_s1 = smov 2   ;;  %s34_s23 = int_to_ptr.vmem [resolvable:$true] %s33_s23 }
   0x8   :  { %39 = dma.hbm_to_vmem [thread:$0]  %s32_s19, 64, %s34_s23, [#allocation7], %s179_s24, %s179_s24, %s180_s1  }
   0x9   :  { %169 = dma.done.wait [#allocation4], 256  }
   0xa   :  { %170 = vsyncadd [#allocation4], 4294967040 }
   0xb   :  { %171 = dma.done.wait [#allocation7], 64  }
   0xc   :  { %172 = vsyncadd [#allocation7], 4294967232  ;;  %v57_v0 = vstv %s220_s0  ;;  %v48_v1 = vld [vmem:[#allocation3] sm:$0xff]  ;;  %v87_v2 = vld [vmem:[#allocation6] sm:$0xf]   ;;  %s181_s2 = smov [#allocation8]  }
   0xd   :  { %v49_v3 = vld [vmem:[#allocation3 + $0x8] sm:$0xff]  ;;  %v88_v4 = vunpack.c.0.s8 %v87_v2  ;;  %v58_v5 = vsub.f32 %v57_v0, %v48_v1  ;;  %v89_v6 = vunpack.c.1.s8 %v87_v2  ;;  %s70_s27 = sshll.u32 %s181_s2, 4  ;;  %s72_s30 = sshll.u32 %s223_s3, 4  ;;  %s71_s27 = int_to_ptr.vmem [resolvable:$true] %s70_s27  ;;  %s73_s30 = int_to_ptr.hbm [resolvable:$true] %s72_s30 }
   0xe   :  { %v59_v7 = vsub.f32 %v57_v0, %v49_v3 }
   0xf   :  { %v54_v8 = vcvt.s32.f32 %v88_v4  ;;  %v55_v9 = vcvt.s32.f32 %v89_v6 }
  0x11   :  { %v60_v10 = vmul.f32 %v58_v5, %v54_v8  ;;  %v61_v11 = vmul.f32 %v59_v7, %v55_v9 }
  0x13   :  { %v62_v12 = vadd.f32 %v60_v10, %v48_v1  ;;  %v63_v13 = vadd.f32 %v61_v11, %v49_v3 }
  0x15   :  { %64 = vst [vmem:[#allocation8] sm:$0xff] %v62_v12 }
  0x16   :  { %65 = vst [vmem:[#allocation8 + $0x8] sm:$0xff] %v63_v13 }
  0x17   :  { %78 = dma.vmem_to_hbm [thread:$0]  %s71_s27, 256, %s73_s30, [#allocation5], %s176_s20, %s176_s20, %s177_s21  }
  0x18   :  { %173 = dma.done.wait [#allocation5], 256  }
  0x19   :  { %174 = vsyncadd [#allocation5], 4294967040 }
  0x1a   :  { %83 = vsyncpa [#allocation4], 1 }
  0x1b   :  { %84 = vsyncpa [#allocation7], 1 }
  0x1c   :  { %85 = vsyncpa [#allocation5], 1 }

</bundles_post_ra>
